<compile_context>
chip_gen: v6e
topology: v6e:2x2x1
jax: 0.10.0
libtpu: 0.0.40
codegen_flags: <defaults>
</compile_context>

<pallas_src>
import functools

import jax
import jax.numpy as jnp
from jax import lax
from jax.experimental import pallas as pl
from jax.experimental.pallas import tpu as pltpu


_TARGET_TILE_BYTES = 8 * 1024 * 1024   # combined streamed input bytes per grid step
_MAX_TILE_ROWS = 4096
_VMEM_LIMIT = 48 * 1024 * 1024         # safe on v5e/v6e (128 MiB) and v7x (64 MiB/TC)


def _round_up(x, m):
    return (x + m - 1) // m * m


def _sublane_multiple(*dtypes):
    """Sublane packing multiple: 8 for 4-byte, 16 for 2-byte, 32 for 1-byte dtypes."""
    m = 8
    for dt in dtypes:
        m = max(m, 32 // max(1, jnp.dtype(dt).itemsize))
    return m


def _choose_row_tile(n_rows, bytes_per_row, sub):
    """Largest byte-capped row tile (multiple of `sub`, <= _MAX_TILE_ROWS)."""
    rows = _TARGET_TILE_BYTES // max(1, bytes_per_row)
    rows = max(sub, min(_MAX_TILE_ROWS, rows))
    rows = min(rows, _round_up(n_rows, sub))
    return int(_round_up(rows, sub))


# ----------------------------------------------------------------------------
# CrossEntropyLoss:  mean_i [ logsumexp(logits_i) - logits_i[target_i] ]
# ----------------------------------------------------------------------------
def _cross_entropy_kernel(logits_ref, targets_ref, out_ref, acc_ref,
                          *, n_rows, row_tile):
    i = pl.program_id(0)

    @pl.when(i == 0)
    def _init():
        acc_ref[...] = jnp.zeros_like(acc_ref)

    x = logits_ref[...].astype(jnp.float32)            # (TN, C)
    tgt = targets_ref[...]                              # (TN, 1) int32

    # numerically stable log-sum-exp along the class (lane) axis
    m = jnp.max(x, axis=-1, keepdims=True)
    lse = m + jnp.log(jnp.sum(jnp.exp(x - m), axis=-1, keepdims=True))

    # gather logits[r, target_r] via a masked select (no one-hot temporary)
    col = lax.broadcasted_iota(jnp.int32, x.shape, 1)
    tgt_logit = jnp.sum(jnp.where(col == tgt, x, 0.0), axis=-1, keepdims=True)

    per_example = lse - tgt_logit                       # (TN, 1)

    # mask rows past the true array end (overhanging / garbage rows)
    row = i * row_tile + lax.broadcasted_iota(jnp.int32, per_example.shape, 0)
    per_example = jnp.where(row < n_rows, per_example, 0.0)

    # row-axis-only accumulation; cross-lane reduce deferred to finalize
    acc_ref[...] += jnp.sum(per_example, axis=0, keepdims=True)

    @pl.when(i == pl.num_programs(0) - 1)
    def _finalize():
        out_ref[...] = acc_ref[...]


def cross_entropy_loss(logits, targets, *, row_tile=None):
    """logits: [N, C] float; targets: [N] int class indices. Returns scalar mean loss."""
    n, c = logits.shape
    tgt2d = targets.reshape(n, 1).astype(jnp.int32)

    sub = _sublane_multiple(logits.dtype, jnp.int32)
    bytes_per_row = c * logits.dtype.itemsize + 4
    tn = row_tile or _choose_row_tile(n, bytes_per_row, sub)

    kernel = functools.partial(_cross_entropy_kernel, n_rows=n, row_tile=tn)

    total = pl.pallas_call(
        kernel,
        out_shape=jax.ShapeDtypeStruct((1, 1), jnp.float32),
        grid_spec=pltpu.PrefetchScalarGridSpec(
            num_scalar_prefetch=0,
            grid=(pl.cdiv(n, tn),),
            in_specs=[
                pl.BlockSpec((tn, c), lambda i: (i, 0)),
                pl.BlockSpec((tn, 1), lambda i: (i, 0)),
            ],
            out_specs=pl.BlockSpec((1, 1), lambda i: (0, 0)),
            scratch_shapes=[pltpu.VMEM((1, 1), jnp.float32)],
        ),
        compiler_params=pltpu.CompilerParams(
            dimension_semantics=("arbitrary",),
            vmem_limit_bytes=_VMEM_LIMIT,
        ),
        cost_estimate=pl.CostEstimate(
            flops=5 * n * c,
            transcendentals=n * c,
            bytes_accessed=n * c * logits.dtype.itemsize + n * 4 + 4,
        ),
    )(logits, tgt2d)

    return total[0, 0] / jnp.float32(n)


# ----------------------------------------------------------------------------
# BCEWithLogitsLoss:  mean( max(x,0) - x*y + log1p(exp(-|x|)) )
# ----------------------------------------------------------------------------
def _bce_with_logits_kernel(logits_ref, targets_ref, out_ref, acc_ref,
                            *, n_rows, row_tile):
    i = pl.program_id(0)

    @pl.when(i == 0)
    def _init():
        acc_ref[...] = jnp.zeros_like(acc_ref)

    x_in = logits_ref[...]                               # native dtype (bf16 stays bf16)
    x = x_in.astype(jnp.float32)
    y = targets_ref[...].astype(jnp.float32)

    # exp(-|x|) in the input dtype (bf16 EUP path on v6e/v7x), rest in f32
    e = jnp.exp(-jnp.abs(x_in)).astype(jnp.float32)
    loss = jnp.maximum(x, 0.0) - x * y + jnp.log1p(e)    # (TN, W)

    row = i * row_tile + lax.broadcasted_iota(jnp.int32, loss.shape, 0)
    loss = jnp.where(row < n_rows, loss, 0.0)

    # lane-wise partial sums; no cross-lane reduce on the per-step path
    acc_ref[...] += jnp.sum(loss, axis=0, keepdims=True)

    @pl.when(i == pl.num_programs(0) - 1)
    def _finalize():
        out_ref[...] = jnp.sum(acc_ref[...], keepdims=True)


def bce_with_logits_loss(logits, targets, *, row_tile=None):
    """logits, targets: [N, C] float (targets in [0,1]). Returns scalar mean loss."""
    n, c = logits.shape
    n_elems = n * c

    # cut HBM traffic: {0,1} labels are exact in bf16
    if logits.dtype == jnp.bfloat16 and targets.dtype == jnp.float32:
        targets = targets.astype(jnp.bfloat16)

    # purely elementwise -> flatten narrow-C inputs to a lane-dense view
    x2d, y2d, n_rows = logits, targets, n
    if c < 128:
        for lane_w in (2048, 1024, 512, 256, 128):
            if n_elems % lane_w == 0:
                n_rows = n_elems // lane_w
                x2d = logits.reshape(n_rows, lane_w)
                y2d = targets.reshape(n_rows, lane_w)
                break
    w = x2d.shape[1]

    sub = _sublane_multiple(x2d.dtype, y2d.dtype)
    bytes_per_row = w * (x2d.dtype.itemsize + y2d.dtype.itemsize)
    tn = row_tile or _choose_row_tile(n_rows, bytes_per_row, sub)

    kernel = functools.partial(_bce_with_logits_kernel, n_rows=n_rows, row_tile=tn)

    total = pl.pallas_call(
        kernel,
        out_shape=jax.ShapeDtypeStruct((1, 1), jnp.float32),
        grid_spec=pltpu.PrefetchScalarGridSpec(
            num_scalar_prefetch=0,
            grid=(pl.cdiv(n_rows, tn),),
            in_specs=[
                pl.BlockSpec((tn, w), lambda i: (i, 0)),
                pl.BlockSpec((tn, w), lambda i: (i, 0)),
            ],
            out_specs=pl.BlockSpec((1, 1), lambda i: (0, 0)),
            scratch_shapes=[pltpu.VMEM((1, w), jnp.float32)],
        ),
        compiler_params=pltpu.CompilerParams(
            dimension_semantics=("arbitrary",),
            vmem_limit_bytes=_VMEM_LIMIT,
        ),
        cost_estimate=pl.CostEstimate(
            flops=5 * n_elems,
            transcendentals=2 * n_elems,
            bytes_accessed=n_elems * (x2d.dtype.itemsize + y2d.dtype.itemsize) + 4,
        ),
    )(x2d, y2d)

    return total[0, 0] / jnp.float32(n_elems)


# ----------------------------------------------------------------------------
# Module wrapper (mirrors LossFunction.forward: loss = loss_function(logits, targets))
# ----------------------------------------------------------------------------
class LossFunction:
    def __init__(self, loss_function):
        self.loss_function = loss_function

    def __call__(self, logits, targets):
        return self.loss_function(logits, targets)


# ---------------------------- reference (plain JAX) -------------------------
def _ce_ref(logits, targets):
    logits = logits.astype(jnp.float32)
    lse = jax.scipy.special.logsumexp(logits, axis=-1)
    tgt_logit = jnp.take_along_axis(
        logits, targets[:, None].astype(jnp.int32), axis=-1)[:, 0]
    return jnp.mean(lse - tgt_logit)


def _bce_ref(logits, targets):
    x = logits.astype(jnp.float32)
    y = targets.astype(jnp.float32)
    return jnp.mean(jnp.maximum(x, 0.0) - x * y + jnp.log1p(jnp.exp(-jnp.abs(x))))


if __name__ == "__main__":
    key = jax.random.PRNGKey(0)
    k1, k2, k3, k4 = jax.random.split(key, 4)

    N, C = 8, 32  # small shapes: 8 examples, 32 classes

    # --- CrossEntropyLoss path ---
    logits_ce = jax.random.normal(k1, (N, C), dtype=jnp.float32)
    targets_ce = jax.random.randint(k2, (N,), 0, C, dtype=jnp.int32)
    ce_module = LossFunction(cross_entropy_loss)
    ce = ce_module(logits_ce, targets_ce)
    jax.block_until_ready(ce)
    assert jnp.allclose(ce, _ce_ref(logits_ce, targets_ce), atol=1e-5, rtol=1e-5), ce

    # --- BCEWithLogitsLoss path ---
    logits_bce = jax.random.normal(k3, (N, C), dtype=jnp.float32)
    targets_bce = jax.random.bernoulli(k4, 0.5, (N, C)).astype(jnp.float32)
    bce_module = LossFunction(bce_with_logits_loss)
    bce = bce_module(logits_bce, targets_bce)
    jax.block_until_ready(bce)
    assert jnp.allclose(bce, _bce_ref(logits_bce, targets_bce), atol=1e-5, rtol=1e-5), bce

    print("KERNEL_OK")
</pallas_src>

<mosaic_0001>
module attributes {stable_mosaic.version = 11 : i64} {
  func.func @_cross_entropy_kernel(%arg0: i32, %arg1: memref<8x32xf32, #tpu.memory_space<vmem>>, %arg2: memref<8x1xi32, #tpu.memory_space<vmem>>, %arg3: memref<1x1xf32, #tpu.memory_space<vmem>>, %arg4: memref<1x1xf32, #tpu.memory_space<vmem>>) attributes {dimension_semantics = [#tpu.dimension_semantics<arbitrary>], iteration_bounds = array<i64: 1>, scalar_prefetch = 0 : i64, scratch_operands = 1 : i64, tpu.core_type = #tpu.core_type<tc>, window_params = [{transform_indices = @transform_0, window_bounds = array<i64: 8, 32>}, {transform_indices = @transform_1, window_bounds = array<i64: 8, 1>}, {pipeline_mode = #tpu.pipeline_mode<synchronous>, transform_indices = @transform_2, window_bounds = array<i64: 1, 1>}]} {
    %c0_i32 = arith.constant 0 : i32
    %0 = arith.cmpi eq, %arg0, %c0_i32 : i32
    %1 = arith.extui %0 : i1 to i32
    %c0_i32_0 = arith.constant 0 : i32
    %2 = arith.cmpi ne, %1, %c0_i32_0 : i32
    scf.if %2 {
      %cst_16 = arith.constant 0.000000e+00 : f32
      %38 = vector.broadcast %cst_16 : f32 to vector<1x1xf32>
      %c0_17 = arith.constant 0 : index
      %c0_18 = arith.constant 0 : index
      %39 = vector.load %arg4[%c0_17, %c0_18] : memref<1x1xf32, #tpu.memory_space<vmem>>, vector<1x1xf32>
      tpu.vector_store %arg4[%c0_17, %c0_18], %38 {strides = array<i32>} : memref<1x1xf32, #tpu.memory_space<vmem>>, vector<1x1xf32>,
    } else {
    }
    %c0 = arith.constant 0 : index
    %c0_1 = arith.constant 0 : index
    %3 = vector.load %arg1[%c0, %c0_1] : memref<8x32xf32, #tpu.memory_space<vmem>>, vector<8x32xf32>
    %c0_2 = arith.constant 0 : index
    %c0_3 = arith.constant 0 : index
    %4 = vector.load %arg2[%c0_2, %c0_3] : memref<8x1xi32, #tpu.memory_space<vmem>>, vector<8x1xi32>
    %cst = arith.constant dense<0xFF800000> : vector<8xf32>
    %5 = vector.multi_reduction <maximumf>, %3, %cst [1] : vector<8x32xf32> to vector<8xf32>
    %6 = vector.shape_cast %5 : vector<8xf32> to vector<8x1xf32>
    %7 = vector.broadcast %6 : vector<8x1xf32> to vector<8x32xf32>
    %8 = arith.subf %3, %7 : vector<8x32xf32>
    %9 = math.exp %8 : vector<8x32xf32>
    %cst_4 = arith.constant dense<0.000000e+00> : vector<8xf32>
    %10 = vector.multi_reduction <add>, %9, %cst_4 [1] : vector<8x32xf32> to vector<8xf32>
    %11 = vector.shape_cast %10 : vector<8xf32> to vector<8x1xf32>
    %12 = math.log %11 : vector<8x1xf32>
    %13 = arith.addf %6, %12 : vector<8x1xf32>
    %14 = tpu.iota {dimensions = array<i32: 1>} : vector<8x32xi32>
    %15 = vector.broadcast %4 : vector<8x1xi32> to vector<8x32xi32>
    %16 = arith.cmpi eq, %14, %15 : vector<8x32xi32>
    %cst_5 = arith.constant 0.000000e+00 : f32
    %17 = vector.broadcast %cst_5 : f32 to vector<8x32xf32>
    %18 = arith.select %16, %3, %17 : vector<8x32xi1>, vector<8x32xf32>
    %cst_6 = arith.constant dense<0.000000e+00> : vector<8xf32>
    %19 = vector.multi_reduction <add>, %18, %cst_6 [1] : vector<8x32xf32> to vector<8xf32>
    %20 = vector.shape_cast %19 : vector<8xf32> to vector<8x1xf32>
    %21 = arith.subf %13, %20 : vector<8x1xf32>
    %c8_i32 = arith.constant 8 : i32
    %22 = arith.muli %arg0, %c8_i32 : i32
    %23 = tpu.iota {dimensions = array<i32: 0>} : vector<8x1xi32>
    %24 = vector.broadcast %22 : i32 to vector<8x1xi32>
    %25 = arith.addi %24, %23 : vector<8x1xi32>
    %c8_i32_7 = arith.constant 8 : i32
    %26 = vector.broadcast %c8_i32_7 : i32 to vector<8x1xi32>
    %27 = arith.cmpi slt, %25, %26 : vector<8x1xi32>
    %cst_8 = arith.constant 0.000000e+00 : f32
    %28 = vector.broadcast %cst_8 : f32 to vector<8x1xf32>
    %29 = arith.select %27, %21, %28 : vector<8x1xi1>, vector<8x1xf32>
    %c0_9 = arith.constant 0 : index
    %c0_10 = arith.constant 0 : index
    %30 = vector.load %arg4[%c0_9, %c0_10] : memref<1x1xf32, #tpu.memory_space<vmem>>, vector<1x1xf32>
    %cst_11 = arith.constant dense<0.000000e+00> : vector<1xf32>
    %31 = vector.multi_reduction <add>, %29, %cst_11 [0] : vector<8x1xf32> to vector<1xf32>
    %32 = vector.shape_cast %31 : vector<1xf32> to vector<1x1xf32>
    %33 = arith.addf %30, %32 : vector<1x1xf32>
    %c0_12 = arith.constant 0 : index
    %c0_13 = arith.constant 0 : index
    %34 = vector.load %arg4[%c0_12, %c0_13] : memref<1x1xf32, #tpu.memory_space<vmem>>, vector<1x1xf32>
    tpu.vector_store %arg4[%c0_12, %c0_13], %33 {strides = array<i32>} : memref<1x1xf32, #tpu.memory_space<vmem>>, vector<1x1xf32>,
    %c0_i32_14 = arith.constant 0 : i32
    %35 = arith.cmpi eq, %arg0, %c0_i32_14 : i32
    %36 = arith.extui %35 : i1 to i32
    %c0_i32_15 = arith.constant 0 : i32
    %37 = arith.cmpi ne, %36, %c0_i32_15 : i32
    scf.if %37 {
      %c0_16 = arith.constant 0 : index
      %c0_17 = arith.constant 0 : index
      %38 = vector.load %arg4[%c0_16, %c0_17] : memref<1x1xf32, #tpu.memory_space<vmem>>, vector<1x1xf32>
      %c0_18 = arith.constant 0 : index
      %c0_19 = arith.constant 0 : index
      %39 = vector.load %arg3[%c0_18, %c0_19] : memref<1x1xf32, #tpu.memory_space<vmem>>, vector<1x1xf32>
      tpu.vector_store %arg3[%c0_18, %c0_19], %38 {strides = array<i32>} : memref<1x1xf32, #tpu.memory_space<vmem>>, vector<1x1xf32>,
    } else {
    }
    return
  }
  func.func @transform_0(%arg0: i32) -> (i32, i32) {
    %c0_i32 = arith.constant 0 : i32
    %c0_i32_0 = arith.constant 0 : i32
    return %arg0, %c0_i32 : i32, i32
  }
  func.func @transform_1(%arg0: i32) -> (i32, i32) {
    %c0_i32 = arith.constant 0 : i32
    %c0_i32_0 = arith.constant 0 : i32
    return %arg0, %c0_i32 : i32, i32
  }
  func.func @transform_2(%arg0: i32) -> (i32, i32) {
    %c0_i32 = arith.constant 0 : i32
    %c0_i32_0 = arith.constant 0 : i32
    %c0_i32_1 = arith.constant 0 : i32
    return %c0_i32, %c0_i32_0 : i32, i32
  }
}

</mosaic_0001>

<bundles_post_ra>
// kernel: tpu_custom_call.1
= control target key start
LH: loop header
LB: loop body
LE: loop exit
PB: predicated region body
PF: predicated region fallthrough
CT: control target
= control target key end

     0   :  { %vm20_vm0 = vcmask 261120   ;;  %s143_s0 = inlined_call_operand.vmem [shape: f32[8,32], index: 0, kind: input, shape index: {}]   ;;  %s144_s1 = inlined_call_operand.vmem [shape: s32[8,1], index: 1, kind: input, shape index: {}]   ;;  %s145_s2 = inlined_call_operand.hbm [shape: f32[1,1], index: 2, kind: output, shape index: {}]  }
   0x1   :  { %v18_v0 = vld [vmem:[%s143_s0] sm:$0xff] }
   0x2   :  { %7 = vsyncpa [#allocation4], 0  ;;  %v21_v1 = vsel %vm20_vm0, %v18_v0, -inf  ;;  %v110_v2 = vmov 0   ;;  %v19_v3 = vld [vmem:[%s144_s1] sm:$0xff]  ;;  %v33_v7 = vlaneseq  ;;  %vm16_vm2 = vcmask 0  }
   0x3   :  { %83 = vset.pattern.permute.xlu0 %v110_v2  ;;  %v111_v14 = vmov 0.0   ;;  %s112_s0 = smov [#allocation3]  }
   0x4   :  { %22 = vmax.xlane.f32.xlu0 %v21_v1  ;;  %v34_v8 = vand.u32 127, %v33_v7  ;;  %17 = vst.msk [vmem:[#allocation2] sm:$0x1] %vm16_vm2, %v111_v14  ;;  %s72_s1 = sshll.u32 %s112_s0, 4  ;;  %s73_s1 = int_to_ptr.vmem [resolvable:$true] %s72_s1 }
   0x5   :  { %s88_s13 = scalar_lea.vmem %s73_s1, 16  ;;  %s92_s14 = scalar_lea.vmem %s73_s1, 32 }
   0x6   :  { %p89_p0 = scmp.ne.s32.totalorder %s73_s1, %s88_s13  ;;  %p93_p1 = scmp.lt.s32.totalorder %s73_s1, %s73_s1 }
   0x7   :  { %p94_p2 = scmp.lt.s32.totalorder %s92_s14, %s88_s13 }
   0x9   :  { %p95_p3 = por %p94_p2, %p93_p1 }
   0xb   :  { %v51_v26 = vld [vmem:[#allocation2] sm:$0x1]  ;;  %p96_p4 = pnand %p95_p3, %p89_p0 }
  0x1a   :  { %36 = vperm.xlu0 %83, %v19_v3  }
  0x8d   :  { %v23_v4 = vpop.xlane.xlu0 %22 }
  0x8e   :  { %v24_v5 = vsub.f32 %v18_v0, %v23_v4 }
  0x90   :  { %v25_v6 = vmul.f32 1.442695, %v24_v5 }
  0x92   :  { %84 = vpow2.f32 %v25_v6 }
  0x95   :  { %v37_v9 = vpop.permute.xlu0 %36 }
  0x96   :  { %vm38_vm1 = vcmp.eq.s32.totalorder %v34_v8, %v37_v9 }
  0x97   :  { %v39_v11 = vsel %vm38_vm1, %v18_v0, 0.0 }
  0x98   :  { %v40_v13 = vsel %vm20_vm0, %v39_v11, 0.0 }
  0x9f   :  { %v85_v10 = vpop.eup %84 }
  0xa0   :  { %v27_v12 = vsel %vm20_vm0, %v85_v10, 0.0 }
  0xa1   :  { %28 = vadd.xlane.f32.xlu1 %v27_v12 }
  0xa5   :  { %41 = vadd.xlane.f32.xlu1 %v40_v13 }
 0x12a   :  { %v29_v15 = vpop.xlane.xlu1 %28 }
 0x12b   :  { %86 = vlog2.f32 %v29_v15 }
 0x12e   :  { %v42_v18 = vpop.xlane.xlu1 %41 }
 0x138   :  { %v87_v16 = vpop.eup %86 }
 0x139   :  { %v31_v17 = vmul.f32 0.6931472, %v87_v16 }
 0x13b   :  { %v32_v19 = vadd.f32 %v31_v17, %v23_v4 }
 0x13d   :  { %v43_v20 = vsub.f32 %v32_v19, %v42_v18 }
 0x13f   :  { %v52_v21 = vrot.slane %v43_v20, 4 }
 0x141   :  { %v53_v22 = vadd.f32 %v52_v21, %v43_v20 }
 0x143   :  { %v54_v23 = vrot.slane %v53_v22, 2 }
 0x145   :  { %v55_v24 = vadd.f32 %v54_v23, %v53_v22 }
 0x147   :  { %v56_v25 = vrot.slane %v55_v24, 1 }
 0x149   :  { %v57_v27 = vadd.f32 %v56_v25, %v55_v24 }
 0x14b   :  { %v58_v28 = vadd.f32 %v57_v27, %v51_v26 }
 0x14d   :  { %60 = vst.msk [vmem:[#allocation2] sm:$0x1] %vm16_vm2, %v58_v28 }
 0x154   :  { %v64_v29 = vld [vmem:[#allocation2] sm:$0x1] }
 0x155   :  { %65 = vst.msk [vmem:[#allocation3] sm:$0x1] %vm16_vm2, %v64_v29 }
 0x156   :  { %99 = shalt.err (!%p96_p4)
}
 0x157   :  { %75 = dma.vmem_to_hbm [thread:$0]  %s73_s1, 16, %s145_s2, [#allocation4]  }
 0x158   :  { %108 = dma.done.wait [#allocation4], 16  }
 0x159   :  { %109 = vsyncadd [#allocation4], 4294967280 }
 0x15a   :  { %79 = vsyncpa [#allocation4], 1 }

</bundles_post_ra>
